<compile_context>
chip_gen: v6e
topology: v6e:2x2x1
jax: 0.10.0
libtpu: 0.0.40
codegen_flags: <defaults>
</compile_context>

<pallas_src>
import numpy as np
import jax
import jax.numpy as jnp
from jax import lax
from jax.experimental import pallas as pl
from jax.experimental.pallas import tpu as pltpu


# ----------------------------- fused Pallas kernel --------------------------

def _critic_fused_kernel(x_ref, c1w_ref, c1b_ref, c2w_ref, c2b_ref,
                         d1w_ref, d1b_ref, d2w_ref, d2b_ref,
                         vw_ref, vb_ref, o_ref):
    """Whole Critic forward for one (row_block, K) tile of flattened states.

    The two Conv3d layers are pre-folded into dense matrices (zero-padded to
    128-multiples), so the network is 4 MXU matmuls with bias+ReLU epilogues
    plus a VPU/XLU dot for the final 32->1 value head.  bf16 inputs/weights,
    f32 accumulation / biases / output.
    """
    x = x_ref[...]                                                    # (rb, K) bf16
    h = jnp.dot(x, c1w_ref[...], preferred_element_type=jnp.float32)
    h = jnp.maximum(h + c1b_ref[...], 0.0).astype(jnp.bfloat16)       # (rb, 256)
    h = jnp.dot(h, c2w_ref[...], preferred_element_type=jnp.float32)
    h = jnp.maximum(h + c2b_ref[...], 0.0).astype(jnp.bfloat16)       # (rb, 384)
    h = jnp.dot(h, d1w_ref[...], preferred_element_type=jnp.float32)
    h = jnp.maximum(h + d1b_ref[...], 0.0).astype(jnp.bfloat16)       # (rb, 64)
    h = jnp.dot(h, d2w_ref[...], preferred_element_type=jnp.float32)
    h = jnp.maximum(h + d2b_ref[...], 0.0)                            # (rb, 32) f32
    # Final 32->1 value layer on the VPU + cross-lane reduce: a 1-column MXU
    # matmul would cost a full MXU push/drain for <1% utilization.
    o_ref[...] = jnp.sum(h * vw_ref[...], axis=-1, keepdims=True) + vb_ref[...]


# ------------------- one-time host-side weight preprocessing ----------------

def _conv3d_to_dense(w, b, in_shape, stride):
    """Fold a Conv3d (padding=0, dilation=1) into a dense matmul.

    w: (O, C, kd, kh, kw) PyTorch layout; b: (O,); in_shape: (C, D, H, W).
    Returns (W_dense, b_dense, out_shape) with W_dense of shape
    (C*D*H*W, O*Do*Ho*Wo) such that, for x flattened row-major NCDHW,
        conv(x).reshape(N, -1) == x.reshape(N, -1) @ W_dense + b_dense
    with the output also row-major NCDHW (exactly torch's flatten order).
    """
    w = np.asarray(w, np.float32)
    b = np.asarray(b, np.float32)
    O, C, kd, kh, kw = w.shape
    Ci, D, H, W = in_shape
    assert Ci == C
    sd, sh, sw = stride
    Do = (D - kd) // sd + 1
    Ho = (H - kh) // sh + 1
    Wo = (W - kw) // sw + 1
    dense = np.zeros((C * D * H * W, O * Do * Ho * Wo), np.float32)
    for o in range(O):
        for do in range(Do):
            for ho in range(Ho):
                for wo in range(Wo):
                    col = ((o * Do + do) * Ho + ho) * Wo + wo
                    for c in range(C):
                        for z in range(kd):
                            for y in range(kh):
                                for xk in range(kw):
                                    row = (((c * D + do * sd + z) * H
                                            + ho * sh + y) * W
                                           + wo * sw + xk)
                                    dense[row, col] = w[o, c, z, y, xk]
    bias = np.repeat(b, Do * Ho * Wo)
    return dense, bias, (O, Do, Ho, Wo)


def _round_up(v, m):
    return ((v + m - 1) // m) * m


def pack_params(params, time_steps, map_size):
    """Fold convs to dense, zero-pad widths to 128-multiples, cast to bf16."""
    in_shape1 = (time_steps, time_steps, map_size, map_size)         # (C, D, H, W)
    c1w, c1b, out1 = _conv3d_to_dense(params["conv1_w"], params["conv1_b"],
                                      in_shape1, (2, 2, 2))
    c2w, c2b, _ = _conv3d_to_dense(params["conv2_w"], params["conv2_b"],
                                   out1, (1, 1, 1))

    k1, n1 = c1w.shape                       # (C*D*H*W, conv1_flat)
    k1p = _round_up(k1, 128)
    n1p = _round_up(n1, 128)                 # 196 -> 256
    n2 = c2w.shape[1]
    n2p = _round_up(n2, 128)                 # 288 -> 384

    c1w_p = np.zeros((k1p, n1p), np.float32); c1w_p[:k1, :n1] = c1w
    c1b_p = np.zeros((n1p,), np.float32);     c1b_p[:n1] = c1b
    c2w_p = np.zeros((n1p, n2p), np.float32); c2w_p[:n1, :n2] = c2w
    c2b_p = np.zeros((n2p,), np.float32);     c2b_p[:n2] = c2b

    d1w = np.asarray(params["d1_w"], np.float32)                     # (288, 64)
    d1w_p = np.zeros((n2p, d1w.shape[1]), np.float32); d1w_p[:n2, :] = d1w
    d2w = np.asarray(params["d2_w"], np.float32)                     # (64, 32)
    vw = np.asarray(params["v_w"], np.float32).reshape(1, -1)        # (1, 32)

    # Scaling guard (perf review): the conv1 dense fold grows as
    # (C*D*H*W) x (O*Do*Ho*Wo); at larger map_size switch conv1 back to an
    # im2col matmul instead of folding.  At the module's 2x2x16x16 size the
    # folded weights are well under 1 MiB.
    folded_bytes = 2 * (c1w_p.size + c2w_p.size + d1w_p.size + d2w.size)
    assert folded_bytes < 8 * 1024 * 1024, folded_bytes

    def bias2d(v):
        return jnp.asarray(np.asarray(v, np.float32).reshape(1, -1))

    return {
        "c1_w": jnp.asarray(c1w_p, jnp.bfloat16), "c1_b": bias2d(c1b_p),
        "c2_w": jnp.asarray(c2w_p, jnp.bfloat16), "c2_b": bias2d(c2b_p),
        "d1_w": jnp.asarray(d1w_p, jnp.bfloat16), "d1_b": bias2d(params["d1_b"]),
        "d2_w": jnp.asarray(d2w, jnp.bfloat16),   "d2_b": bias2d(params["d2_b"]),
        "v_w": jnp.asarray(vw, jnp.float32),
        "v_b": bias2d(params["v_b"]),
    }


# ----------------------------- Critic forward ------------------------------

def _default_max_row_block():
    """1024-row tiles on v6e/v7x; 512 elsewhere (v5e 16 MiB scoped-VMEM default)."""
    try:
        kind = jax.devices()[0].device_kind.lower()
    except Exception:
        return 512
    if "v6" in kind or "v7" in kind or "7x" in kind:
        return 1024
    return 512


def _choose_row_block(n, max_rb):
    """Multiple-of-8 row tile; aim for >=2 grid steps (v7x megacore) when N>8."""
    if n <= 8:
        return 8
    return min(max_rb, _round_up(-(-n // 2), 8))


def critic_forward(packed, states, *, max_row_block=None):
    """states: (N, C=T, D=T, H=map, W=map) float -> (N, 1) float32 values."""
    if max_row_block is None:
        max_row_block = _default_max_row_block()
    N = states.shape[0]
    Kp = packed["c1_w"].shape[0]

    # Contiguous NCDHW flatten (matches torch nn.Flatten); bf16 halves the only
    # per-step HBM stream and is the native MXU input rate.
    x = states.reshape(N, -1).astype(jnp.bfloat16)
    if x.shape[1] < Kp:                       # feature padding to 128-multiple K
        x = jnp.pad(x, ((0, 0), (0, Kp - x.shape[1])))

    rb = _choose_row_block(N, max_row_block)
    n_pad = (-N) % rb
    if n_pad:                                 # zero-pad tail rows; sliced off below
        x = jnp.pad(x, ((0, n_pad), (0, 0)))
    n_rows = N + n_pad
    n_blocks = n_rows // rb

    weights = (packed["c1_w"], packed["c1_b"], packed["c2_w"], packed["c2_b"],
               packed["d1_w"], packed["d1_b"], packed["d2_w"], packed["d2_b"],
               packed["v_w"], packed["v_b"])

    out = pl.pallas_call(
        _critic_fused_kernel,
        out_shape=jax.ShapeDtypeStruct((n_rows, 1), jnp.float32),
        grid=(n_blocks,),
        in_specs=[pl.BlockSpec((rb, Kp), lambda i: (i, 0))]          # streamed x
                 + [pl.BlockSpec(w.shape, lambda i: (0, 0))           # resident weights
                    for w in weights],
        out_specs=pl.BlockSpec((rb, 1), lambda i: (i, 0)),
        compiler_params=pltpu.CompilerParams(
            dimension_semantics=("parallel",),
            vmem_limit_bytes=32 * 1024 * 1024),
    )(x, *weights)
    return out[:N]


# ----------------------------- parameter setup -----------------------------

def init_params(key, time_steps, map_size):
    """Deterministic synthetic init (PyTorch-style uniform +-1/sqrt(fan_in))."""
    def uni(k, shape, fan_in):
        bound = 1.0 / jnp.sqrt(jnp.asarray(fan_in, jnp.float32))
        return jax.random.uniform(k, shape, jnp.float32, -bound, bound)

    # conv output spatial sizes
    d1 = (time_steps - 1) // 2 + 1
    h1 = (map_size - 3) // 2 + 1
    d2 = d1 - 1 + 1
    h2 = h1 - 2 + 1
    in_features = 8 * d2 * h2 * h2

    ks = jax.random.split(key, 10)
    return {
        "conv1_w": uni(ks[0], (4, time_steps, 1, 3, 3), time_steps * 9),
        "conv1_b": uni(ks[1], (4,), time_steps * 9),
        "conv2_w": uni(ks[2], (8, 4, 1, 2, 2), 4 * 4),
        "conv2_b": uni(ks[3], (8,), 4 * 4),
        "d1_w": uni(ks[4], (in_features, 64), in_features),
        "d1_b": uni(ks[5], (64,), in_features),
        "d2_w": uni(ks[6], (64, 32), 64),
        "d2_b": uni(ks[7], (32,), 64),
        "v_w": uni(ks[8], (32, 1), 32),
        "v_b": uni(ks[9], (1,), 32),
    }, in_features


# ----------------------------- pure-JAX reference --------------------------

def critic_reference(params, states):
    def conv(x, w, b, stride):
        out = lax.conv_general_dilated(
            x, w, window_strides=stride, padding="VALID",
            dimension_numbers=("NCDHW", "OIDHW", "NCDHW"))
        return jnp.maximum(out + b.reshape(1, -1, 1, 1, 1), 0.0)

    h = conv(states, params["conv1_w"], params["conv1_b"], (2, 2, 2))
    h = conv(h, params["conv2_w"], params["conv2_b"], (1, 1, 1))
    flat = h.reshape(h.shape[0], -1)
    h = jnp.maximum(flat @ params["d1_w"] + params["d1_b"], 0.0)
    h = jnp.maximum(h @ params["d2_w"] + params["d2_b"], 0.0)
    return h @ params["v_w"] + params["v_b"]


# ----------------------------- main -----------------------------------------

if __name__ == "__main__":
    key = jax.random.PRNGKey(0)
    batch, time_steps, map_size, vision_range = 2, 2, 16, 4  # vision_range unused in fwd

    k_param, k_x, k_xb = jax.random.split(key, 3)
    params, _ = init_params(k_param, time_steps, map_size)
    packed = pack_params(params, time_steps, map_size)

    fwd = jax.jit(lambda s: critic_forward(packed, s))

    # Small batch: (N, C=time_steps, D=time_steps, H=map_size, W=map_size)
    states = jax.random.normal(
        k_x, (batch, time_steps, time_steps, map_size, map_size), jnp.float32)
    value = jax.block_until_ready(fwd(states))
    ref = jax.block_until_ready(critic_reference(params, states))
    assert value.shape == (batch, 1), value.shape
    assert jnp.allclose(value, ref, atol=4e-2, rtol=4e-2), (
        float(jnp.max(jnp.abs(value - ref))))

    # Large, non-divisible PPO rollout batch: exercises tail zero-padding and
    # the multi-step "parallel" grid (2 blocks of 256 rows here).
    big = 500
    states_big = jax.random.normal(
        k_xb, (big, time_steps, time_steps, map_size, map_size), jnp.float32)
    value_big = jax.block_until_ready(fwd(states_big))
    ref_big = jax.block_until_ready(critic_reference(params, states_big))
    assert value_big.shape == (big, 1), value_big.shape
    assert jnp.allclose(value_big, ref_big, atol=4e-2, rtol=4e-2), (
        float(jnp.max(jnp.abs(value_big - ref_big))))

    print("KERNEL_OK")
</pallas_src>

<mosaic_0001>
module attributes {stable_mosaic.version = 11 : i64} {
  func.func @_critic_fused_kernel(%arg0: i32, %arg1: memref<8x1024xbf16, #tpu.memory_space<vmem>>, %arg2: memref<1024x256xbf16, #tpu.memory_space<vmem>>, %arg3: memref<1x256xf32, #tpu.memory_space<vmem>>, %arg4: memref<256x384xbf16, #tpu.memory_space<vmem>>, %arg5: memref<1x384xf32, #tpu.memory_space<vmem>>, %arg6: memref<384x64xbf16, #tpu.memory_space<vmem>>, %arg7: memref<1x64xf32, #tpu.memory_space<vmem>>, %arg8: memref<64x32xbf16, #tpu.memory_space<vmem>>, %arg9: memref<1x32xf32, #tpu.memory_space<vmem>>, %arg10: memref<1x32xf32, #tpu.memory_space<vmem>>, %arg11: memref<1x1xf32, #tpu.memory_space<vmem>>, %arg12: memref<8x1xf32, #tpu.memory_space<vmem>>) attributes {dimension_semantics = [#tpu.dimension_semantics<parallel>], iteration_bounds = array<i64: 1>, scalar_prefetch = 0 : i64, scratch_operands = 0 : i64, tpu.core_type = #tpu.core_type<tc>, window_params = [{transform_indices = @transform_0, window_bounds = array<i64: 8, 1024>}, {pipeline_mode = #tpu.pipeline_mode<synchronous>, transform_indices = @transform_1, window_bounds = array<i64: 1024, 256>}, {pipeline_mode = #tpu.pipeline_mode<synchronous>, transform_indices = @transform_2, window_bounds = array<i64: 1, 256>}, {pipeline_mode = #tpu.pipeline_mode<synchronous>, transform_indices = @transform_3, window_bounds = array<i64: 256, 384>}, {pipeline_mode = #tpu.pipeline_mode<synchronous>, transform_indices = @transform_4, window_bounds = array<i64: 1, 384>}, {pipeline_mode = #tpu.pipeline_mode<synchronous>, transform_indices = @transform_5, window_bounds = array<i64: 384, 64>}, {pipeline_mode = #tpu.pipeline_mode<synchronous>, transform_indices = @transform_6, window_bounds = array<i64: 1, 64>}, {pipeline_mode = #tpu.pipeline_mode<synchronous>, transform_indices = @transform_7, window_bounds = array<i64: 64, 32>}, {pipeline_mode = #tpu.pipeline_mode<synchronous>, transform_indices = @transform_8, window_bounds = array<i64: 1, 32>}, {pipeline_mode = #tpu.pipeline_mode<synchronous>, transform_indices = @transform_9, window_bounds = array<i64: 1, 32>}, {pipeline_mode = #tpu.pipeline_mode<synchronous>, transform_indices = @transform_10, window_bounds = array<i64: 1, 1>}, {transform_indices = @transform_11, window_bounds = array<i64: 8, 1>}]} {
    %c0 = arith.constant 0 : index
    %c0_0 = arith.constant 0 : index
    %0 = vector.load %arg1[%c0, %c0_0] : memref<8x1024xbf16, #tpu.memory_space<vmem>>, vector<8x1024xbf16>
    %c0_1 = arith.constant 0 : index
    %c0_2 = arith.constant 0 : index
    %1 = vector.load %arg2[%c0_1, %c0_2] : memref<1024x256xbf16, #tpu.memory_space<vmem>>, vector<1024x256xbf16>
    %cst = arith.constant dense<0.000000e+00> : vector<8x256xf32>
    %2 = tpu.matmul %0, %1, %cst {dimension_numbers = #tpu.dot_dimension_numbers<[1], [0], [0], [1], [0, 0, 1, 1], [], []>} : vector<8x1024xbf16>, vector<1024x256xbf16>, vector<8x256xf32> -> vector<8x256xf32>
    %c0_3 = arith.constant 0 : index
    %c0_4 = arith.constant 0 : index
    %3 = vector.load %arg3[%c0_3, %c0_4] : memref<1x256xf32, #tpu.memory_space<vmem>>, vector<1x256xf32>
    %4 = vector.broadcast %3 : vector<1x256xf32> to vector<8x256xf32>
    %5 = arith.addf %2, %4 : vector<8x256xf32>
    %cst_5 = arith.constant 0.000000e+00 : f32
    %6 = vector.broadcast %cst_5 : f32 to vector<8x256xf32>
    %7 = arith.maximumf %5, %6 : vector<8x256xf32>
    %8 = arith.truncf %7 : vector<8x256xf32> to vector<8x256xbf16>
    %c0_6 = arith.constant 0 : index
    %c0_7 = arith.constant 0 : index
    %9 = vector.load %arg4[%c0_6, %c0_7] : memref<256x384xbf16, #tpu.memory_space<vmem>>, vector<256x384xbf16>
    %cst_8 = arith.constant dense<0.000000e+00> : vector<8x384xf32>
    %10 = tpu.matmul %8, %9, %cst_8 {dimension_numbers = #tpu.dot_dimension_numbers<[1], [0], [0], [1], [0, 0, 1, 1], [], []>} : vector<8x256xbf16>, vector<256x384xbf16>, vector<8x384xf32> -> vector<8x384xf32>
    %c0_9 = arith.constant 0 : index
    %c0_10 = arith.constant 0 : index
    %11 = vector.load %arg5[%c0_9, %c0_10] : memref<1x384xf32, #tpu.memory_space<vmem>>, vector<1x384xf32>
    %12 = vector.broadcast %11 : vector<1x384xf32> to vector<8x384xf32>
    %13 = arith.addf %10, %12 : vector<8x384xf32>
    %cst_11 = arith.constant 0.000000e+00 : f32
    %14 = vector.broadcast %cst_11 : f32 to vector<8x384xf32>
    %15 = arith.maximumf %13, %14 : vector<8x384xf32>
    %16 = arith.truncf %15 : vector<8x384xf32> to vector<8x384xbf16>
    %c0_12 = arith.constant 0 : index
    %c0_13 = arith.constant 0 : index
    %17 = vector.load %arg6[%c0_12, %c0_13] : memref<384x64xbf16, #tpu.memory_space<vmem>>, vector<384x64xbf16>
    %cst_14 = arith.constant dense<0.000000e+00> : vector<8x64xf32>
    %18 = tpu.matmul %16, %17, %cst_14 {dimension_numbers = #tpu.dot_dimension_numbers<[1], [0], [0], [1], [0, 0, 1, 1], [], []>} : vector<8x384xbf16>, vector<384x64xbf16>, vector<8x64xf32> -> vector<8x64xf32>
    %c0_15 = arith.constant 0 : index
    %c0_16 = arith.constant 0 : index
    %19 = vector.load %arg7[%c0_15, %c0_16] : memref<1x64xf32, #tpu.memory_space<vmem>>, vector<1x64xf32>
    %20 = vector.broadcast %19 : vector<1x64xf32> to vector<8x64xf32>
    %21 = arith.addf %18, %20 : vector<8x64xf32>
    %cst_17 = arith.constant 0.000000e+00 : f32
    %22 = vector.broadcast %cst_17 : f32 to vector<8x64xf32>
    %23 = arith.maximumf %21, %22 : vector<8x64xf32>
    %24 = arith.truncf %23 : vector<8x64xf32> to vector<8x64xbf16>
    %c0_18 = arith.constant 0 : index
    %c0_19 = arith.constant 0 : index
    %25 = vector.load %arg8[%c0_18, %c0_19] : memref<64x32xbf16, #tpu.memory_space<vmem>>, vector<64x32xbf16>
    %cst_20 = arith.constant dense<0.000000e+00> : vector<8x32xf32>
    %26 = tpu.matmul %24, %25, %cst_20 {dimension_numbers = #tpu.dot_dimension_numbers<[1], [0], [0], [1], [0, 0, 1, 1], [], []>} : vector<8x64xbf16>, vector<64x32xbf16>, vector<8x32xf32> -> vector<8x32xf32>
    %c0_21 = arith.constant 0 : index
    %c0_22 = arith.constant 0 : index
    %27 = vector.load %arg9[%c0_21, %c0_22] : memref<1x32xf32, #tpu.memory_space<vmem>>, vector<1x32xf32>
    %28 = vector.broadcast %27 : vector<1x32xf32> to vector<8x32xf32>
    %29 = arith.addf %26, %28 : vector<8x32xf32>
    %cst_23 = arith.constant 0.000000e+00 : f32
    %30 = vector.broadcast %cst_23 : f32 to vector<8x32xf32>
    %31 = arith.maximumf %29, %30 : vector<8x32xf32>
    %c0_24 = arith.constant 0 : index
    %c0_25 = arith.constant 0 : index
    %32 = vector.load %arg10[%c0_24, %c0_25] : memref<1x32xf32, #tpu.memory_space<vmem>>, vector<1x32xf32>
    %33 = vector.broadcast %32 : vector<1x32xf32> to vector<8x32xf32>
    %34 = arith.mulf %31, %33 : vector<8x32xf32>
    %cst_26 = arith.constant dense<0.000000e+00> : vector<8xf32>
    %35 = vector.multi_reduction <add>, %34, %cst_26 [1] : vector<8x32xf32> to vector<8xf32>
    %36 = vector.shape_cast %35 : vector<8xf32> to vector<8x1xf32>
    %c0_27 = arith.constant 0 : index
    %c0_28 = arith.constant 0 : index
    %37 = vector.load %arg11[%c0_27, %c0_28] : memref<1x1xf32, #tpu.memory_space<vmem>>, vector<1x1xf32>
    %38 = vector.broadcast %37 : vector<1x1xf32> to vector<8x1xf32>
    %39 = arith.addf %36, %38 : vector<8x1xf32>
    %c0_29 = arith.constant 0 : index
    %c0_30 = arith.constant 0 : index
    %40 = vector.load %arg12[%c0_29, %c0_30] : memref<8x1xf32, #tpu.memory_space<vmem>>, vector<8x1xf32>
    tpu.vector_store %arg12[%c0_29, %c0_30], %39 {strides = array<i32>} : memref<8x1xf32, #tpu.memory_space<vmem>>, vector<8x1xf32>,
    return
  }
  func.func @transform_0(%arg0: i32) -> (i32, i32) {
    %c0_i32 = arith.constant 0 : i32
    %c0_i32_0 = arith.constant 0 : i32
    return %arg0, %c0_i32 : i32, i32
  }
  func.func @transform_1(%arg0: i32) -> (i32, i32) {
    %c0_i32 = arith.constant 0 : i32
    %c0_i32_0 = arith.constant 0 : i32
    %c0_i32_1 = arith.constant 0 : i32
    return %c0_i32, %c0_i32_0 : i32, i32
  }
  func.func @transform_2(%arg0: i32) -> (i32, i32) {
    %c0_i32 = arith.constant 0 : i32
    %c0_i32_0 = arith.constant 0 : i32
    %c0_i32_1 = arith.constant 0 : i32
    return %c0_i32, %c0_i32_0 : i32, i32
  }
  func.func @transform_3(%arg0: i32) -> (i32, i32) {
    %c0_i32 = arith.constant 0 : i32
    %c0_i32_0 = arith.constant 0 : i32
    %c0_i32_1 = arith.constant 0 : i32
    return %c0_i32, %c0_i32_0 : i32, i32
  }
  func.func @transform_4(%arg0: i32) -> (i32, i32) {
    %c0_i32 = arith.constant 0 : i32
    %c0_i32_0 = arith.constant 0 : i32
    %c0_i32_1 = arith.constant 0 : i32
    return %c0_i32, %c0_i32_0 : i32, i32
  }
  func.func @transform_5(%arg0: i32) -> (i32, i32) {
    %c0_i32 = arith.constant 0 : i32
    %c0_i32_0 = arith.constant 0 : i32
    %c0_i32_1 = arith.constant 0 : i32
    return %c0_i32, %c0_i32_0 : i32, i32
  }
  func.func @transform_6(%arg0: i32) -> (i32, i32) {
    %c0_i32 = arith.constant 0 : i32
    %c0_i32_0 = arith.constant 0 : i32
    %c0_i32_1 = arith.constant 0 : i32
    return %c0_i32, %c0_i32_0 : i32, i32
  }
  func.func @transform_7(%arg0: i32) -> (i32, i32) {
    %c0_i32 = arith.constant 0 : i32
    %c0_i32_0 = arith.constant 0 : i32
    %c0_i32_1 = arith.constant 0 : i32
    return %c0_i32, %c0_i32_0 : i32, i32
  }
  func.func @transform_8(%arg0: i32) -> (i32, i32) {
    %c0_i32 = arith.constant 0 : i32
    %c0_i32_0 = arith.constant 0 : i32
    %c0_i32_1 = arith.constant 0 : i32
    return %c0_i32, %c0_i32_0 : i32, i32
  }
  func.func @transform_9(%arg0: i32) -> (i32, i32) {
    %c0_i32 = arith.constant 0 : i32
    %c0_i32_0 = arith.constant 0 : i32
    %c0_i32_1 = arith.constant 0 : i32
    return %c0_i32, %c0_i32_0 : i32, i32
  }
  func.func @transform_10(%arg0: i32) -> (i32, i32) {
    %c0_i32 = arith.constant 0 : i32
    %c0_i32_0 = arith.constant 0 : i32
    %c0_i32_1 = arith.constant 0 : i32
    return %c0_i32, %c0_i32_0 : i32, i32
  }
  func.func @transform_11(%arg0: i32) -> (i32, i32) {
    %c0_i32 = arith.constant 0 : i32
    %c0_i32_0 = arith.constant 0 : i32
    return %arg0, %c0_i32 : i32, i32
  }
}

</mosaic_0001>

<bundles_post_ra>
// kernel: _lambda_.1
= control target key start
LH: loop header
LB: loop body
LE: loop exit
PB: predicated region body
PF: predicated region fallthrough
CT: control target
= control target key end

     0   :  { %s2749_s0 = inlined_call_operand.vmem [shape: bf16[8,1024], index: 0, kind: input, shape index: {}]   ;;  %s2750_s1 = inlined_call_operand.hbm [shape: bf16[1024,256], index: 1, kind: input, shape index: {}]   ;;  %s2751_s2 = inlined_call_operand.vmem [shape: f32[1,256], index: 2, kind: input, shape index: {}]   ;;  %s2752_s3 = inlined_call_operand.hbm [shape: bf16[256,384], index: 3, kind: input, shape index: {}]   ;;  %s2753_s4 = inlined_call_operand.vmem [shape: f32[1,384], index: 4, kind: input, shape index: {}]   ;;  %s2754_s5 = inlined_call_operand.vmem [shape: bf16[384,64], index: 5, kind: input, shape index: {}]   ;;  %s2755_s6 = inlined_call_operand.vmem [shape: f32[1,64], index: 6, kind: input, shape index: {}]   ;;  %s2756_s7 = inlined_call_operand.vmem [shape: bf16[64,32], index: 7, kind: input, shape index: {}]   ;;  %s2757_s8 = inlined_call_operand.vmem [shape: f32[1,32], index: 8, kind: input, shape index: {}]   ;;  %s2758_s9 = inlined_call_operand.vmem [shape: f32[1,32], index: 9, kind: input, shape index: {}]   ;;  %s2759_s10 = inlined_call_operand.<no memory space> [shape: f32[1,1], index: 10, kind: input, shape index: {}]   ;;  %s2760_s11 = inlined_call_operand.vmem [shape: f32[8,1], index: 11, kind: output, shape index: {}]  }
   0x1   :  { %v16_v0 = vstv %s2759_s10 }
   0x2   :  { %17 = vst [vmem:[#allocation2] sm:$0x1] %v16_v0 }
   0x3   :  { %18 = vsyncpa [#allocation4], 0 }
   0x4   :  { %19 = vsyncpa [#allocation6], 0  ;;  %s2517_s19 = smov [#allocation3]  }
   0x5   :  { %s27_s20 = sshll.u32 %s2517_s19, 4  ;;  %s28_s20 = int_to_ptr.vmem [resolvable:$true] %s27_s20 }
   0x6   :  { %s2481_s21 = scalar_lea.vmem %s28_s20, 16384  ;;  %p2486_p1 = scmp.lt.s32.totalorder %s28_s20, %s28_s20 }
   0x7   :  { %p2482_p0 = scmp.ne.s32.totalorder %s28_s20, %s2481_s21  ;;  %p2487_p2 = scmp.lt.s32.totalorder %s2481_s21, %s2481_s21 }
   0x9   :  { %p2488_p3 = por %p2487_p2, %p2486_p1 }
   0xb   :  { %p2489_p4 = pnand %p2488_p3, %p2482_p0 }
   0xd   :  { %2492 = shalt.err (!%p2489_p4)
}
   0xe   :  { %s2518_s22 = smov 128   ;;  %s2519_s23 = smov 8  }
   0xf   :  { %33 = dma.hbm_to_vmem [thread:$0]  %s2750_s1, 16384, %s28_s20, [#allocation4], %s2518_s22, %s2518_s22, %s2519_s23  }
  0x10   :  { %s2520_s10 = smov [#allocation5]  }
  0x11   :  { %s41_s26 = sshll.u32 %s2520_s10, 4  ;;  %s42_s26 = int_to_ptr.vmem [resolvable:$true] %s41_s26 }
  0x12   :  { %s2501_s27 = scalar_lea.vmem %s42_s26, 6144  ;;  %p2506_p6 = scmp.lt.s32.totalorder %s42_s26, %s42_s26 }
  0x13   :  { %p2502_p5 = scmp.ne.s32.totalorder %s42_s26, %s2501_s27  ;;  %p2507_p7 = scmp.lt.s32.totalorder %s2501_s27, %s2501_s27 }
  0x15   :  { %p2508_p8 = por %p2507_p7, %p2506_p6 }
  0x17   :  { %p2509_p9 = pnand %p2508_p8, %p2502_p5 }
  0x19   :  { %2512 = shalt.err (!%p2509_p9)
}
  0x1a   :  { %s2521_s28 = smov 192   ;;  %s2522_s29 = smov 12  }
  0x1b   :  { %47 = dma.hbm_to_vmem [thread:$0]  %s2752_s3, 6144, %s42_s26, [#allocation6], %s2521_s28, %s2521_s28, %s2522_s29  }
  0x1c   :  { %2513 = dma.done.wait [#allocation4], 16384  }
  0x1d   :  { %2514 = vsyncadd [#allocation4], 4294950912 }
  0x1e   :  { %2515 = dma.done.wait [#allocation6], 6144  }
  0x1f   :  { %2516 = vsyncadd [#allocation6], 4294961152  ;;  %v2181_v1 = vld [vmem:[#allocation3 + $0x74] ss:$8 sps:$4 sm:$0xff]   ;;  %v2185_v3 = vld [vmem:[#allocation3 + $0x70] ss:$8 sps:$4 sm:$0xff]  }
  0x20   :  { %v2183_v2 = vld [vmem:[#allocation3 + $0x174] ss:$8 sps:$4 sm:$0xff]   ;;  %881 = vmatprep.subr.bf16.mxu0 %v2181_v1  ;;  %v2186_v4 = vld [vmem:[#allocation3 + $0x170] ss:$8 sps:$4 sm:$0xff]   ;;  %v2187_v5 = vld [vmem:[#allocation3 + $0x64] ss:$8 sps:$4 sm:$0xff]  }
  0x21   :  { %922 = vmatprep.subr.bf16.mxu1 %v2183_v2  ;;  %882 = vmatpush1.bf16.msra.mxu0 %v2185_v3  ;;  %v2189_v6 = vld [vmem:[#allocation3 + $0x164] ss:$8 sps:$4 sm:$0xff]   ;;  %v2191_v7 = vld [vmem:[#allocation3 + $0x60] ss:$8 sps:$4 sm:$0xff]   ;;  %v2193_v9 = vld [vmem:[#allocation3 + $0x54] ss:$8 sps:$4 sm:$0xff]  }
  0x22   :  { %923 = vmatpush1.bf16.msra.mxu1 %v2186_v4  ;;  %883 = vmatprep.subr.bf16.mxu0 %v2187_v5  ;;  %v2192_v8 = vld [vmem:[#allocation3 + $0x160] ss:$8 sps:$4 sm:$0xff]   ;;  %v2195_v10 = vld [vmem:[#allocation3 + $0x154] ss:$8 sps:$4 sm:$0xff]   ;;  %v2197_v11 = vld [vmem:[#allocation3 + $0x50] ss:$8 sps:$4 sm:$0xff]  }
  0x23   :  { %924 = vmatprep.subr.bf16.mxu1 %v2189_v6  ;;  %v2198_v12 = vld [vmem:[#allocation3 + $0x150] ss:$8 sps:$4 sm:$0xff]   ;;  %v2199_v13 = vld [vmem:[#allocation3 + $0x44] ss:$8 sps:$4 sm:$0xff]   ;;  %v2203_v15 = vld [vmem:[#allocation3 + $0x40] ss:$8 sps:$4 sm:$0xff]  }
  0x24   :  { %v2201_v14 = vld [vmem:[#allocation3 + $0x144] ss:$8 sps:$4 sm:$0xff]   ;;  %v2204_v16 = vld [vmem:[#allocation3 + $0x140] ss:$8 sps:$4 sm:$0xff]   ;;  %v2205_v17 = vld [vmem:[#allocation3 + $0x34] ss:$8 sps:$4 sm:$0xff]  }
  0x25   :  { %884 = vmatpush1.bf16.msra.mxu0 %v2191_v7  ;;  %v2207_v18 = vld [vmem:[#allocation3 + $0x134] ss:$8 sps:$4 sm:$0xff]   ;;  %v2209_v19 = vld [vmem:[#allocation3 + $0x30] ss:$8 sps:$4 sm:$0xff]   ;;  %v2211_v21 = vld [vmem:[#allocation3 + $0x24] ss:$8 sps:$4 sm:$0xff]  }
  0x26   :  { %925 = vmatpush1.bf16.msra.mxu1 %v2192_v8  ;;  %885 = vmatprep.subr.bf16.mxu0 %v2193_v9  ;;  %v2210_v20 = vld [vmem:[#allocation3 + $0x130] ss:$8 sps:$4 sm:$0xff]   ;;  %v2213_v22 = vld [vmem:[#allocation3 + $0x124] ss:$8 sps:$4 sm:$0xff]   ;;  %v2215_v23 = vld [vmem:[#allocation3 + $0x20] ss:$8 sps:$4 sm:$0xff]  }
  0x27   :  { %926 = vmatprep.subr.bf16.mxu1 %v2195_v10  ;;  %v2216_v24 = vld [vmem:[#allocation3 + $0x120] ss:$8 sps:$4 sm:$0xff]   ;;  %v2217_v25 = vld [vmem:[#allocation3 + $0x14] ss:$8 sps:$4 sm:$0xff]   ;;  %v2221_v27 = vld [vmem:[#allocation3 + $0x10] ss:$8 sps:$4 sm:$0xff]  }
  0x28   :  { %v2219_v26 = vld [vmem:[#allocation3 + $0x114] ss:$8 sps:$4 sm:$0xff]   ;;  %v2222_v28 = vld [vmem:[#allocation3 + $0x110] ss:$8 sps:$4 sm:$0xff]   ;;  %v2223_v29 = vld [vmem:[#allocation3 + $0x4] ss:$8 sps:$4 sm:$0xff]  }
  0x29   :  { %886 = vmatpush1.bf16.msra.mxu0 %v2197_v11  ;;  %v2225_v30 = vld [vmem:[#allocation3 + $0x104] ss:$8 sps:$4 sm:$0xff]   ;;  %v2227_v31 = vld [vmem:[#allocation3] ss:$8 sps:$4 sm:$0xff]   ;;  %v2229_v33 = vld [vmem:[#allocation3 + $0xf4] ss:$8 sps:$4 sm:$0xff]  }
  0x2a   :  { %927 = vmatpush1.bf16.msra.mxu1 %v2198_v12  ;;  %887 = vmatprep.subr.bf16.mxu0 %v2199_v13  ;;  %v2228_v32 = vld [vmem:[#allocation3 + $0x100] ss:$8 sps:$4 sm:$0xff]   ;;  %v2231_v34 = vld [vmem:[#allocation3 + $0x1f4] ss:$8 sps:$4 sm:$0xff]   ;;  %v2233_v35 = vld [vmem:[#allocation3 + $0xf0] ss:$8 sps:$4 sm:$0xff]  }
  0x2b   :  { %928 = vmatprep.subr.bf16.mxu1 %v2201_v14  ;;  %v2234_v36 = vld [vmem:[#allocation3 + $0x1f0] ss:$8 sps:$4 sm:$0xff]   ;;  %v2235_v37 = vld [vmem:[#allocation3 + $0xe4] ss:$8 sps:$4 sm:$0xff]   ;;  %v2239_v39 = vld [vmem:[#allocation3 + $0xe0] ss:$8 sps:$4 sm:$0xff]  }
  0x2c   :  { %v2237_v38 = vld [vmem:[#allocation3 + $0x1e4] ss:$8 sps:$4 sm:$0xff]   ;;  %v2240_v40 = vld [vmem:[#allocation3 + $0x1e0] ss:$8 sps:$4 sm:$0xff]   ;;  %v2241_v41 = vld [vmem:[#allocation3 + $0xd4] ss:$8 sps:$4 sm:$0xff]  }
  0x2d   :  { %888 = vmatpush1.bf16.msra.mxu0 %v2203_v15  ;;  %v2243_v42 = vld [vmem:[#allocation3 + $0x1d4] ss:$8 sps:$4 sm:$0xff]   ;;  %v2245_v43 = vld [vmem:[#allocation3 + $0xd0] ss:$8 sps:$4 sm:$0xff]   ;;  %v2247_v45 = vld [vmem:[#allocation3 + $0xc4] ss:$8 sps:$4 sm:$0xff]  }
  0x2e   :  { %929 = vmatpush1.bf16.msra.mxu1 %v2204_v16  ;;  %889 = vmatprep.subr.bf16.mxu0 %v2205_v17  ;;  %v2246_v44 = vld [vmem:[#allocation3 + $0x1d0] ss:$8 sps:$4 sm:$0xff]   ;;  %v2249_v46 = vld [vmem:[#allocation3 + $0x1c4] ss:$8 sps:$4 sm:$0xff]   ;;  %v2251_v50 = vld [vmem:[#allocation3 + $0xc0] ss:$8 sps:$4 sm:$0xff]  }
  0x2f   :  { %930 = vmatprep.subr.bf16.mxu1 %v2207_v18  ;;  %v69_v47 = vld [vmem:[%s2749_s0] sm:$0xff]  ;;  %v70_v49 = vld [vmem:[%s2749_s0 + $0x8] sm:$0xff]  ;;  %v2257_v55 = vld [vmem:[#allocation3 + $0xb0] ss:$8 sps:$4 sm:$0xff]   ;;  %vm2524_vm0 = vmmov 0   ;;  %vm1793_vm1 = vcmask 523264  }
  0x30   :  { %v1867_v48 = vcombine.high %v69_v47, %v69_v47  ;;  %v2252_v51 = vld [vmem:[#allocation3 + $0x1c0] ss:$8 sps:$4 sm:$0xff]   ;;  %v1869_v52 = vcombine.high %v70_v49, %v70_v49  ;;  %v2253_v53 = vld [vmem:[#allocation3 + $0xb4] ss:$8 sps:$4 sm:$0xff]   ;;  %v2258_v56 = vld [vmem:[#allocation3 + $0x1b0] ss:$8 sps:$4 sm:$0xff]   ;;  %v1866_v7 = vcombine.low %v69_v47, %v69_v47  ;;  %v1868_v8 = vcombine.low %v70_v49, %v70_v49 }
  0x31   :  { %890 = vmatpush1.bf16.msra.mxu0 %v2209_v19  ;;  %v2255_v54 = vld [vmem:[#allocation3 + $0x1b4] ss:$8 sps:$4 sm:$0xff]   ;;  %v2259_v57 = vld [vmem:[#allocation3 + $0xa4] ss:$8 sps:$4 sm:$0xff]   ;;  %v2263_v59 = vld [vmem:[#allocation3 + $0xa0] ss:$8 sps:$4 sm:$0xff]  }
  0x32   :  { %931 = vmatpush1.bf16.msra.mxu1 %v2210_v20  ;;  %891 = vmatprep.subr.bf16.mxu0 %v2211_v21  ;;  %v2261_v58 = vld [vmem:[#allocation3 + $0x1a4] ss:$8 sps:$4 sm:$0xff]   ;;  %v2264_v60 = vld [vmem:[#allocation3 + $0x1a0] ss:$8 sps:$4 sm:$0xff]   ;;  %v2265_v61 = vld [vmem:[#allocation3 + $0x94] ss:$8 sps:$4 sm:$0xff]  }
  0x33   :  { %932 = vmatprep.subr.bf16.mxu1 %v2213_v22  ;;  %913 = vmatprep.mubr.bf16.mxu0 %v1867_v48  ;;  %v2267_v62 = vld [vmem:[#allocation3 + $0x194] ss:$8 sps:$4 sm:$0xff]   ;;  %v2269_v63 = vld [vmem:[#allocation3 + $0x90] ss:$8 sps:$4 sm:$0xff]   ;;  %v2271_v1 = vld [vmem:[#allocation3 + $0x84] ss:$8 sps:$4 sm:$0xff]  }
  0x34   :  { %954 = vmatprep.mubr.bf16.mxu1 %v1869_v52  ;;  %v2270_v0 = vld [vmem:[#allocation3 + $0x190] ss:$8 sps:$4 sm:$0xff]   ;;  %v2273_v2 = vld [vmem:[#allocation3 + $0x184] ss:$8 sps:$4 sm:$0xff]   ;;  %v2275_v3 = vld [vmem:[#allocation3 + $0x80] ss:$8 sps:$4 sm:$0xff]  }
  0x35   :  { %892 = vmatpush1.bf16.msra.mxu0 %v2215_v23  ;;  %v2276_v4 = vld [vmem:[#allocation3 + $0x180] ss:$8 sps:$4 sm:$0xff]   ;;  %v2283_v5 = vld [vmem:[#allocation3 + $0x274] ss:$8 sps:$4 sm:$0xff]   ;;  %v2281_v9 = vld [vmem:[#allocation3 + $0x270] ss:$8 sps:$4 sm:$0xff]  }
  0x36   :  { %933 = vmatpush1.bf16.msra.mxu1 %v2216_v24  ;;  %893 = vmatprep.subr.bf16.mxu0 %v2217_v25  ;;  %v2286_v6 = vld [vmem:[#allocation3 + $0x374] ss:$8 sps:$4 sm:$0xff]   ;;  %v2284_v10 = vld [vmem:[#allocation3 + $0x370] ss:$8 sps:$4 sm:$0xff]   ;;  %v2289_v11 = vld [vmem:[#allocation3 + $0x264] ss:$8 sps:$4 sm:$0xff]  }
  0x37   :  { %934 = vmatprep.subr.bf16.mxu1 %v2219_v26  ;;  %v2292_v12 = vld [vmem:[#allocation3 + $0x364] ss:$8 sps:$4 sm:$0xff]   ;;  %v2287_v13 = vld [vmem:[#allocation3 + $0x260] ss:$8 sps:$4 sm:$0xff]   ;;  %v2295_v15 = vld [vmem:[#allocation3 + $0x254] ss:$8 sps:$4 sm:$0xff]  }
  0x38   :  { %v2290_v14 = vld [vmem:[#allocation3 + $0x360] ss:$8 sps:$4 sm:$0xff]   ;;  %v2298_v16 = vld [vmem:[#allocation3 + $0x354] ss:$8 sps:$4 sm:$0xff]   ;;  %v2293_v17 = vld [vmem:[#allocation3 + $0x250] ss:$8 sps:$4 sm:$0xff]  }
  0x39   :  { %894 = vmatpush1.bf16.msra.mxu0 %v2221_v27  ;;  %v2296_v18 = vld [vmem:[#allocation3 + $0x350] ss:$8 sps:$4 sm:$0xff]   ;;  %v2301_v19 = vld [vmem:[#allocation3 + $0x244] ss:$8 sps:$4 sm:$0xff]   ;;  %v2299_v21 = vld [vmem:[#allocation3 + $0x240] ss:$8 sps:$4 sm:$0xff]  }
  0x3a   :  { %935 = vmatpush1.bf16.msra.mxu1 %v2222_v28  ;;  %895 = vmatprep.subr.bf16.mxu0 %v2223_v29  ;;  %v2304_v20 = vld [vmem:[#allocation3 + $0x344] ss:$8 sps:$4 sm:$0xff]   ;;  %v2302_v22 = vld [vmem:[#allocation3 + $0x340] ss:$8 sps:$4 sm:$0xff]   ;;  %v2307_v23 = vld [vmem:[#allocation3 + $0x234] ss:$8 sps:$4 sm:$0xff]  }
  0x3b   :  { %936 = vmatprep.subr.bf16.mxu1 %v2225_v30  ;;  %v2310_v24 = vld [vmem:[#allocation3 + $0x334] ss:$8 sps:$4 sm:$0xff]   ;;  %v2305_v25 = vld [vmem:[#allocation3 + $0x230] ss:$8 sps:$4 sm:$0xff]   ;;  %v2313_v27 = vld [vmem:[#allocation3 + $0x224] ss:$8 sps:$4 sm:$0xff]  }
  0x3c   :  { %v2308_v26 = vld [vmem:[#allocation3 + $0x330] ss:$8 sps:$4 sm:$0xff]   ;;  %v2316_v28 = vld [vmem:[#allocation3 + $0x324] ss:$8 sps:$4 sm:$0xff]   ;;  %v2311_v29 = vld [vmem:[#allocation3 + $0x220] ss:$8 sps:$4 sm:$0xff]  }
  0x3d   :  { %896 = vmatpush1.bf16.msra.mxu0 %v2227_v31  ;;  %v2314_v30 = vld [vmem:[#allocation3 + $0x320] ss:$8 sps:$4 sm:$0xff]   ;;  %v2319_v31 = vld [vmem:[#allocation3 + $0x214] ss:$8 sps:$4 sm:$0xff]   ;;  %v2337_v47 = vld [vmem:[#allocation3 + $0x2e4] ss:$8 sps:$4 sm:$0xff]  }
  0x3e   :  { %937 = vmatpush1.bf16.msra.mxu1 %v2228_v32  ;;  %897 = vmatprep.subr.bf16.mxu0 %v2229_v33  ;;  %v2322_v32 = vld [vmem:[#allocation3 + $0x314] ss:$8 sps:$4 sm:$0xff]   ;;  %v2317_v33 = vld [vmem:[#allocation3 + $0x210] ss:$8 sps:$4 sm:$0xff]   ;;  %v2340_v48 = vld [vmem:[#allocation3 + $0x3e4] ss:$8 sps:$4 sm:$0xff]  }
  0x3f   :  { %938 = vmatprep.subr.bf16.mxu1 %v2231_v34  ;;  %v2320_v34 = vld [vmem:[#allocation3 + $0x310] ss:$8 sps:$4 sm:$0xff]   ;;  %v2335_v49 = vld [vmem:[#allocation3 + $0x2e0] ss:$8 sps:$4 sm:$0xff]   ;;  %v2346_v52 = vld [vmem:[#allocation3 + $0x3d4] ss:$8 sps:$4 sm:$0xff]  }
  0x40   :  { %vm1846_vm2 = vcmask 261120   ;;  %vm1858_vm3 = vcmask 7168  }
  0x41   :  { %898 = vmatpush2.bf16.msra.mxu0 %v2233_v35  ;;  %v2603_v35 = vld [vmem:[%s2749_s0 + $0x10] sm:$0xff] }
  0x42   :  { %939 = vmatpush2.bf16.msra.mxu1 %v2234_v36  ;;  %899 = vmatprep.subr.bf16.mxu0 %v2235_v37  ;;  %v2608_v36 = vld [vmem:[%s2749_s0 + $0x18] sm:$0xff]  ;;  %v2325_v37 = vld [vmem:[#allocation3 + $0x204] ss:$8 sps:$4 sm:$0xff]  }
  0x43   :  { %940 = vmatprep.subr.bf16.mxu1 %v2237_v38  ;;  %v2328_v38 = vld [vmem:[#allocation3 + $0x304] ss:$8 sps:$4 sm:$0xff]  }
  0x45   :  { %900 = vmatpush2.bf16.msra.mxu0 %v2239_v39  ;;  %v1871_v39 = vcombine.high %v2603_v35, %v2603_v35 }
  0x46   :  { %941 = vmatpush2.bf16.msra.mxu1 %v2240_v40  ;;  %901 = vmatprep.subr.bf16.mxu0 %v2241_v41  ;;  %v1873_v40 = vcombine.high %v2608_v36, %v2608_v36  ;;  %v2323_v41 = vld [vmem:[#allocation3 + $0x200] ss:$8 sps:$4 sm:$0xff]  }
  0x47   :  { %942 = vmatprep.subr.bf16.mxu1 %v2243_v42  ;;  %v2326_v42 = vld [vmem:[#allocation3 + $0x300] ss:$8 sps:$4 sm:$0xff]  }
  0x49   :  { %902 = vmatpush2.bf16.msra.mxu0 %v2245_v43  ;;  %v2331_v43 = vld [vmem:[#allocation3 + $0x2f4] ss:$8 sps:$4 sm:$0xff]  }
  0x4a   :  { %943 = vmatpush2.bf16.msra.mxu1 %v2246_v44  ;;  %903 = vmatprep.subr.bf16.mxu0 %v2247_v45  ;;  %v2334_v44 = vld [vmem:[#allocation3 + $0x3f4] ss:$8 sps:$4 sm:$0xff]   ;;  %v2329_v45 = vld [vmem:[#allocation3 + $0x2f0] ss:$8 sps:$4 sm:$0xff]  }
  0x4b   :  { %944 = vmatprep.subr.bf16.mxu1 %v2249_v46  ;;  %v2332_v46 = vld [vmem:[#allocation3 + $0x3f0] ss:$8 sps:$4 sm:$0xff]  }
  0x4d   :  { %904 = vmatpush2.bf16.msra.mxu0 %v2251_v50  ;;  %v2338_v50 = vld [vmem:[#allocation3 + $0x3e0] ss:$8 sps:$4 sm:$0xff]  }
  0x4e   :  { %945 = vmatpush2.bf16.msra.mxu1 %v2252_v51  ;;  %905 = vmatprep.subr.bf16.mxu0 %v2253_v53  ;;  %v2343_v51 = vld [vmem:[#allocation3 + $0x2d4] ss:$8 sps:$4 sm:$0xff]   ;;  %v2341_v53 = vld [vmem:[#allocation3 + $0x2d0] ss:$8 sps:$4 sm:$0xff]  }
  0x4f   :  { %946 = vmatprep.subr.bf16.mxu1 %v2255_v54  ;;  %v2344_v54 = vld [vmem:[#allocation3 + $0x3d0] ss:$8 sps:$4 sm:$0xff]  }
  0x51   :  { %906 = vmatpush2.bf16.msra.mxu0 %v2257_v55  ;;  %v2349_v55 = vld [vmem:[#allocation3 + $0x2c4] ss:$8 sps:$4 sm:$0xff]  }
  0x52   :  { %947 = vmatpush2.bf16.msra.mxu1 %v2258_v56  ;;  %907 = vmatprep.subr.bf16.mxu0 %v2259_v57  ;;  %v2352_v56 = vld [vmem:[#allocation3 + $0x3c4] ss:$8 sps:$4 sm:$0xff]   ;;  %v2347_v57 = vld [vmem:[#allocation3 + $0x2c0] ss:$8 sps:$4 sm:$0xff]  }
  0x53   :  { %948 = vmatprep.subr.bf16.mxu1 %v2261_v58  ;;  %v2350_v58 = vld [vmem:[#allocation3 + $0x3c0] ss:$8 sps:$4 sm:$0xff]  }
  0x55   :  { %908 = vmatpush2.bf16.msra.mxu0 %v2263_v59  ;;  %v2355_v59 = vld [vmem:[#allocation3 + $0x2b4] ss:$8 sps:$4 sm:$0xff]  }
  0x56   :  { %949 = vmatpush2.bf16.msra.mxu1 %v2264_v60  ;;  %909 = vmatprep.subr.bf16.mxu0 %v2265_v61  ;;  %v2358_v60 = vld [vmem:[#allocation3 + $0x3b4] ss:$8 sps:$4 sm:$0xff]   ;;  %v2353_v61 = vld [vmem:[#allocation3 + $0x2b0] ss:$8 sps:$4 sm:$0xff]  }
  0x57   :  { %950 = vmatprep.subr.bf16.mxu1 %v2267_v62  ;;  %v2356_v62 = vld [vmem:[#allocation3 + $0x3b0] ss:$8 sps:$4 sm:$0xff]  }
  0x59   :  { %910 = vmatpush2.bf16.msra.mxu0 %v2269_v63  ;;  %v2361_v63 = vld [vmem:[#allocation3 + $0x2a4] ss:$8 sps:$4 sm:$0xff]  }
  0x5a   :  { %951 = vmatpush2.bf16.msra.mxu1 %v2270_v0  ;;  %911 = vmatprep.subr.bf16.mxu0 %v2271_v1  ;;  %v2364_v0 = vld [vmem:[#allocation3 + $0x3a4] ss:$8 sps:$4 sm:$0xff]   ;;  %v2359_v1 = vld [vmem:[#allocation3 + $0x2a0] ss:$8 sps:$4 sm:$0xff]  }
  0x5b   :  { %952 = vmatprep.subr.bf16.mxu1 %v2273_v2  ;;  %v2362_v2 = vld [vmem:[#allocation3 + $0x3a0] ss:$8 sps:$4 sm:$0xff]  }
  0x5d   :  { %912 = vmatpush2.bf16.msra.mxu0 %v2275_v3  ;;  %v2367_v3 = vld [vmem:[#allocation3 + $0x294] ss:$8 sps:$4 sm:$0xff]  }
  0x5e   :  { %953 = vmatpush2.bf16.msra.mxu1 %v2276_v4  ;;  %963 = vmatprep.subr.bf16.mxu0 %v2283_v5  ;;  %v2370_v4 = vld [vmem:[#allocation3 + $0x394] ss:$8 sps:$4 sm:$0xff]   ;;  %v2365_v5 = vld [vmem:[#allocation3 + $0x290] ss:$8 sps:$4 sm:$0xff]  }
  0x5f   :  { %1004 = vmatprep.subr.bf16.mxu1 %v2286_v6  ;;  %v2368_v6 = vld [vmem:[#allocation3 + $0x390] ss:$8 sps:$4 sm:$0xff]  }
  0x60   :  { %914 = vmatmul.mubr.bf16.vlgmr.msra.gmra.mxu0 %v1866_v7  ;;  %v2373_v7 = vld [vmem:[#allocation3 + $0x284] ss:$8 sps:$4 sm:$0xff]  }
  0x61   :  { %955 = vmatmul.mubr.bf16.vlgmr.msra.gmra.mxu1 %v1868_v8  ;;  %964 = vmatpush1.bf16.msra.mxu0 %v2281_v9  ;;  %v2376_v8 = vld [vmem:[#allocation3 + $0x384] ss:$8 sps:$4 sm:$0xff]   ;;  %v2371_v9 = vld [vmem:[#allocation3 + $0x280] ss:$8 sps:$4 sm:$0xff]  }
  0x62   :  { %1005 = vmatpush1.bf16.msra.mxu1 %v2284_v10  ;;  %965 = vmatprep.subr.bf16.mxu0 %v2289_v11  ;;  %v2374_v10 = vld [vmem:[#allocation3 + $0x380] ss:$8 sps:$4 sm:$0xff]   ;;  %v1870_v11 = vcombine.low %v2603_v35, %v2603_v35  ;;  %v2429_v35 = vld [vmem:[#allocation5 + $0x50] ss:$12 sps:$4 sm:$0xff]  }
  0x63   :  { %1006 = vmatprep.subr.bf16.mxu1 %v2292_v12  ;;  %995 = vmatprep.mubr.bf16.mxu0 %v1871_v39  ;;  %v1872_v12 = vcombine.low %v2608_v36, %v2608_v36  ;;  %v2399_v36 = vld [vmem:[#allocation5 + $0x18] ss:$12 sps:$4 sm:$0xff]  }
  0x64   :  { %1036 = vmatprep.mubr.bf16.mxu1 %v1873_v40  ;;  %v2407_v39 = vld [vmem:[#allocation5 + $0x16c] ss:$12 sps:$4 sm:$0xff]   ;;  %v2405_v40 = vld [vmem:[#allocation5 + $0x168] ss:$12 sps:$4 sm:$0xff]  }
  0x65   :  { %966 = vmatpush1.bf16.msra.mxu0 %v2287_v13  ;;  %v2381_v13 = vld [vmem:[#allocation5 + $0xa8] ss:$12 sps:$4 sm:$0xff]  }
  0x66   :  { %1007 = vmatpush1.bf16.msra.mxu1 %v2290_v14  ;;  %967 = vmatprep.subr.bf16.mxu0 %v2295_v15  ;;  %v2383_v14 = vld [vmem:[#allocation5 + $0xac] ss:$12 sps:$4 sm:$0xff]   ;;  %v2386_v15 = vld [vmem:[#allocation5 + $0x94] ss:$12 sps:$4 sm:$0xff]  }
  0x67   :  { %1008 = vmatprep.subr.bf16.mxu1 %v2298_v16  ;;  %v2384_v16 = vld [vmem:[#allocation5 + $0x90] ss:$12 sps:$4 sm:$0xff]  }
  0x69   :  { %968 = vmatpush1.bf16.msra.mxu0 %v2293_v17  ;;  %v2389_v17 = vld [vmem:[#allocation5 + $0x7c] ss:$12 sps:$4 sm:$0xff]  }
  0x6a   :  { %1009 = vmatpush1.bf16.msra.mxu1 %v2296_v18  ;;  %969 = vmatprep.subr.bf16.mxu0 %v2301_v19  ;;  %v2408_v18 = vld [vmem:[#allocation5 + $0x170] ss:$12 sps:$4 sm:$0xff]  }
  0x6b   :  { %1010 = vmatprep.subr.bf16.mxu1 %v2304_v20  ;;  %v2409_v19 = vld [vmem:[#allocation5 + $0xb0] ss:$12 sps:$4 sm:$0xff]   ;;  %v2387_v20 = vld [vmem:[#allocation5 + $0x78] ss:$12 sps:$4 sm:$0xff]  }
  0x6d   :  { %970 = vmatpush1.bf16.msra.mxu0 %v2299_v21  ;;  %v2413_v21 = vld [vmem:[#allocation5 + $0x158] ss:$12 sps:$4 sm:$0xff]  }
  0x6e   :  { %1011 = vmatpush1.bf16.msra.mxu1 %v2302_v22  ;;  %971 = vmatprep.subr.bf16.mxu0 %v2307_v23  ;;  %v2392_v22 = vld [vmem:[#allocation5 + $0x64] ss:$12 sps:$4 sm:$0xff]  }
  0x6f   :  { %1012 = vmatprep.subr.bf16.mxu1 %v2310_v24  ;;  %v2414_v23 = vld [vmem:[#allocation5 + $0x98] ss:$12 sps:$4 sm:$0xff]   ;;  %v2418_v24 = vld [vmem:[#allocation5 + $0x140] ss:$12 sps:$4 sm:$0xff]  }
  0x71   :  { %972 = vmatpush1.bf16.msra.mxu0 %v2305_v25  ;;  %v2390_v25 = vld [vmem:[#allocation5 + $0x60] ss:$12 sps:$4 sm:$0xff]  }
  0x72   :  { %1013 = vmatpush1.bf16.msra.mxu1 %v2308_v26  ;;  %973 = vmatprep.subr.bf16.mxu0 %v2313_v27  ;;  %v2395_v26 = vld [vmem:[#allocation5 + $0x4c] ss:$12 sps:$4 sm:$0xff]  }
  0x73   :  { %1014 = vmatprep.subr.bf16.mxu1 %v2316_v28  ;;  %v2419_v27 = vld [vmem:[#allocation5 + $0x80] ss:$12 sps:$4 sm:$0xff]   ;;  %v2423_v28 = vld [vmem:[#allocation5 + $0x128] ss:$12 sps:$4 sm:$0xff]  }
  0x75   :  { %974 = vmatpush1.bf16.msra.mxu0 %v2311_v29  ;;  %v2393_v29 = vld [vmem:[#allocation5 + $0x48] ss:$12 sps:$4 sm:$0xff]  }
  0x76   :  { %1015 = vmatpush1.bf16.msra.mxu1 %v2314_v30  ;;  %975 = vmatprep.subr.bf16.mxu0 %v2319_v31  ;;  %v2398_v30 = vld [vmem:[#allocation5 + $0x34] ss:$12 sps:$4 sm:$0xff]  }
  0x77   :  { %1016 = vmatprep.subr.bf16.mxu1 %v2322_v32  ;;  %v2424_v31 = vld [vmem:[#allocation5 + $0x68] ss:$12 sps:$4 sm:$0xff]   ;;  %v2428_v32 = vld [vmem:[#allocation5 + $0x110] ss:$12 sps:$4 sm:$0xff]  }
  0x79   :  { %976 = vmatpush1.bf16.msra.mxu0 %v2317_v33  ;;  %v2396_v33 = vld [vmem:[#allocation5 + $0x30] ss:$12 sps:$4 sm:$0xff]  }
  0x7a   :  { %1017 = vmatpush1.bf16.msra.mxu1 %v2320_v34  ;;  %977 = vmatprep.subr.bf16.mxu0 %v2325_v37  ;;  %v2401_v34 = vld [vmem:[#allocation5 + $0x1c] ss:$12 sps:$4 sm:$0xff]   ;;  %v2404_v37 = vld [vmem:[#allocation5 + $0x4] ss:$12 sps:$4 sm:$0xff]  }
  0x7b   :  { %1018 = vmatprep.subr.bf16.mxu1 %v2328_v38  ;;  %v2402_v38 = vld [vmem:[#allocation5] ss:$12 sps:$4 sm:$0xff]  }
  0x7d   :  { %978 = vmatpush1.bf16.msra.mxu0 %v2323_v41  ;;  %v2412_v41 = vld [vmem:[#allocation5 + $0x154] ss:$12 sps:$4 sm:$0xff]  }
  0x7e   :  { %1019 = vmatpush1.bf16.msra.mxu1 %v2326_v42  ;;  %979 = vmatprep.subr.bf16.mxu0 %v2331_v43  ;;  %v2410_v42 = vld [vmem:[#allocation5 + $0x150] ss:$12 sps:$4 sm:$0xff]  }
  0x7f   :  { %1020 = vmatprep.subr.bf16.mxu1 %v2334_v44  ;;  %v2417_v43 = vld [vmem:[#allocation5 + $0x13c] ss:$12 sps:$4 sm:$0xff]   ;;  %v2415_v44 = vld [vmem:[#allocation5 + $0x138] ss:$12 sps:$4 sm:$0xff]  }
  0x81   :  { %980 = vmatpush2.bf16.msra.mxu0 %v2329_v45  ;;  %v2422_v45 = vld [vmem:[#allocation5 + $0x124] ss:$12 sps:$4 sm:$0xff]  }
  0x82   :  { %1021 = vmatpush2.bf16.msra.mxu1 %v2332_v46  ;;  %981 = vmatprep.subr.bf16.mxu0 %v2337_v47  ;;  %v2420_v46 = vld [vmem:[#allocation5 + $0x120] ss:$12 sps:$4 sm:$0xff]  }
  0x83   :  { %1022 = vmatprep.subr.bf16.mxu1 %v2340_v48  ;;  %v2427_v47 = vld [vmem:[#allocation5 + $0x10c] ss:$12 sps:$4 sm:$0xff]   ;;  %v2425_v48 = vld [vmem:[#allocation5 + $0x108] ss:$12 sps:$4 sm:$0xff]  }
  0x85   :  { %982 = vmatpush2.bf16.msra.mxu0 %v2335_v49  ;;  %v2432_v49 = vld [vmem:[#allocation5 + $0xf4] ss:$12 sps:$4 sm:$0xff]  }
  0x86   :  { %1023 = vmatpush2.bf16.msra.mxu1 %v2338_v50  ;;  %983 = vmatprep.subr.bf16.mxu0 %v2343_v51  ;;  %v2433_v50 = vld [vmem:[#allocation5 + $0xf8] ss:$12 sps:$4 sm:$0xff]   ;;  %v2430_v51 = vld [vmem:[#allocation5 + $0xf0] ss:$12 sps:$4 sm:$0xff]  }
  0x87   :  { %1024 = vmatprep.subr.bf16.mxu1 %v2346_v52  ;;  %v2434_v52 = vld [vmem:[#allocation5 + $0x38] ss:$12 sps:$4 sm:$0xff]  }
  0x89   :  { %984 = vmatpush2.bf16.msra.mxu0 %v2341_v53  ;;  %v2437_v53 = vld [vmem:[#allocation5 + $0xdc] ss:$12 sps:$4 sm:$0xff]  }
  0x8a   :  { %1025 = vmatpush2.bf16.msra.mxu1 %v2344_v54  ;;  %985 = vmatprep.subr.bf16.mxu0 %v2349_v55  ;;  %v2438_v54 = vld [vmem:[#allocation5 + $0xe0] ss:$12 sps:$4 sm:$0xff]   ;;  %v2435_v55 = vld [vmem:[#allocation5 + $0xd8] ss:$12 sps:$4 sm:$0xff]  }
  0x8b   :  { %1026 = vmatprep.subr.bf16.mxu1 %v2352_v56  ;;  %v2439_v56 = vld [vmem:[#allocation5 + $0x20] ss:$12 sps:$4 sm:$0xff]  }
  0x8d   :  { %986 = vmatpush2.bf16.msra.mxu0 %v2347_v57  ;;  %v2442_v57 = vld [vmem:[#allocation5 + $0xc4] ss:$12 sps:$4 sm:$0xff]  }
  0x8e   :  { %1027 = vmatpush2.bf16.msra.mxu1 %v2350_v58  ;;  %987 = vmatprep.subr.bf16.mxu0 %v2355_v59  ;;  %v2443_v58 = vld [vmem:[#allocation5 + $0xc8] ss:$12 sps:$4 sm:$0xff]   ;;  %v2440_v59 = vld [vmem:[#allocation5 + $0xc0] ss:$12 sps:$4 sm:$0xff]  }
  0x8f   :  { %1028 = vmatprep.subr.bf16.mxu1 %v2358_v60  ;;  %v2444_v60 = vld [vmem:[#allocation5 + $0x8] ss:$12 sps:$4 sm:$0xff]  }
  0x91   :  { %988 = vmatpush2.bf16.msra.mxu0 %v2353_v61  ;;  %v2445_v61 = vld [vmem:[%s2754_s5 + $0x78] sm:$0xff]  }
  0x92   :  { %1029 = vmatpush2.bf16.msra.mxu1 %v2356_v62  ;;  %989 = vmatprep.subr.bf16.mxu0 %v2361_v63  ;;  %v2523_v62 = vmov 0.0  }
  0x93   :  { %1030 = vmatprep.subr.bf16.mxu1 %v2364_v0 }
  0x95   :  { %990 = vmatpush2.bf16.msra.mxu0 %v2359_v1 }
  0x96   :  { %1031 = vmatpush2.bf16.msra.mxu1 %v2362_v2  ;;  %991 = vmatprep.subr.bf16.mxu0 %v2367_v3 }
  0x97   :  { %1032 = vmatprep.subr.bf16.mxu1 %v2370_v4 }
  0x99   :  { %992 = vmatpush2.bf16.msra.mxu0 %v2365_v5 }
  0x9a   :  { %1033 = vmatpush2.bf16.msra.mxu1 %v2368_v6  ;;  %993 = vmatprep.subr.bf16.mxu0 %v2373_v7  ;;  %v203_v7 = vlaneseq }
  0x9b   :  { %1034 = vmatprep.subr.bf16.mxu1 %v2376_v8 }
  0x9c   :  { %v2622_v8 = vshrl.u32 %v203_v7, 7 }
  0x9d   :  { %994 = vmatpush2.bf16.msra.mxu0 %v2371_v9 }
  0x9e   :  { %1035 = vmatpush2.bf16.msra.mxu1 %v2374_v10  ;;  %1386 = vmatprep.subr.bf16.mxu0 %v2383_v14  ;;  %v205_v9 = vsub.s32 0, %v2622_v8  ;;  %v201_v10 = vld [vmem:[%s2751_s2] sm:$0x3] }
  0x9f   :  { %2083 = vmatprep.subr.bf16.mxu1 %v2408_v18 }
  0xa0   :  { %996 = vmatmul.mubr.bf16.vlgmr.msra.gmra.mxu0 %v1870_v11  ;;  %v209_v11 = vsub.s32 1, %v2622_v8 }
  0xa1   :  { %1037 = vmatmul.mubr.bf16.vlgmr.msra.gmra.mxu1 %v1872_v12  ;;  %1387 = vmatpush1.bf16.msra.mxu0 %v2381_v13  ;;  %v206_v12 = vrot.slane %v201_v10, %v205_v9 }
  0xa2   :  { %1388 = vmatprep.subr.bf16.mxu0 %v2386_v15  ;;  %2084 = vmatpush3.bf16.msra.mxu1 %v2409_v19  ;;  %v210_v13 = vrot.slane %v201_v10, %v209_v11 }
  0xa3   :  { %2085 = vmatprep.subr.bf16.mxu1 %v2413_v21 }
  0xa5   :  { %1389 = vmatpush1.bf16.msra.mxu0 %v2384_v16 }
  0xa6   :  { %1390 = vmatprep.subr.bf16.mxu0 %v2389_v17  ;;  %2086 = vmatpush3.bf16.msra.mxu1 %v2414_v23 }
  0xa7   :  { %2087 = vmatprep.subr.bf16.mxu1 %v2418_v24 }
  0xa9   :  { %1391 = vmatpush1.bf16.msra.mxu0 %v2387_v20 }
  0xaa   :  { %1392 = vmatprep.subr.bf16.mxu0 %v2392_v22  ;;  %2088 = vmatpush3.bf16.msra.mxu1 %v2419_v27 }
  0xab   :  { %2089 = vmatprep.subr.bf16.mxu1 %v2423_v28 }
  0xad   :  { %1393 = vmatpush1.bf16.msra.mxu0 %v2390_v25 }
  0xae   :  { %1394 = vmatprep.subr.bf16.mxu0 %v2395_v26  ;;  %2090 = vmatpush3.bf16.msra.mxu1 %v2424_v31 }
  0xaf   :  { %2091 = vmatprep.subr.bf16.mxu1 %v2428_v32 }
  0xb1   :  { %1395 = vmatpush1.bf16.msra.mxu0 %v2393_v29 }
  0xb2   :  { %1396 = vmatprep.subr.bf16.mxu0 %v2398_v30  ;;  %2092 = vmatpush3.bf16.msra.mxu1 %v2429_v35 }
  0xb3   :  { %2093 = vmatprep.subr.bf16.mxu1 %v2433_v50  ;;  %v2462_v50 = vld [vmem:[%s2754_s5 + $0x90] sm:$0xff]  }
  0xb5   :  { %1397 = vmatpush1.bf16.msra.mxu0 %v2396_v33  ;;  %v2446_v33 = vld [vmem:[%s2754_s5 + $0x38] sm:$0xff]  }
  0xb6   :  { %1398 = vmatprep.subr.bf16.mxu0 %v2401_v34  ;;  %2094 = vmatpush3.bf16.msra.mxu1 %v2434_v52  ;;  %v2447_v34 = vld [vmem:[%s2754_s5 + $0xb8] sm:$0xff]   ;;  %v2464_v52 = vld [vmem:[%s2754_s5 + $0x8] sm:$0xff]  }
  0xb7   :  { %2095 = vmatprep.subr.bf16.mxu1 %v2438_v54  ;;  %v2466_v54 = vld [vmem:[%s2754_s5 + $0x40] sm:$0xff]  }
  0xb9   :  { %1399 = vmatpush1.bf16.msra.mxu0 %v2399_v36  ;;  %v2448_v36 = vld [vmem:[%s2754_s5 + $0x70] sm:$0xff]  }
  0xba   :  { %1400 = vmatprep.subr.bf16.mxu0 %v2404_v37  ;;  %2096 = vmatpush3.bf16.msra.mxu1 %v2439_v56  ;;  %v2449_v37 = vld [vmem:[%s2754_s5 + $0x30] sm:$0xff]   ;;  %v2468_v56 = vld [vmem:[%s2754_s5 + $0x80] sm:$0xff]  }
  0xbb   :  { %2097 = vmatprep.subr.bf16.mxu1 %v2443_v58 }
  0xbd   :  { %1401 = vmatpush1.bf16.msra.mxu0 %v2402_v38  ;;  %v2450_v38 = vld [vmem:[%s2754_s5 + $0xb0] sm:$0xff]  }
  0xbe   :  { %1402 = vmatprep.subr.bf16.mxu0 %v2407_v39  ;;  %2098 = vmatpush3.bf16.msra.mxu1 %v2444_v60  ;;  %v2451_v39 = vld [vmem:[%s2754_s5 + $0x68] sm:$0xff]  }
  0xbf   :  { %2105 = vmatprep.subr.bf16.mxu1 %v2445_v61 }
  0xc1   :  { %1403 = vmatpush2.bf16.msra.mxu0 %v2405_v40  ;;  %v2452_v40 = vld [vmem:[%s2754_s5 + $0x28] sm:$0xff]  }
  0xc2   :  { %1404 = vmatprep.subr.bf16.mxu0 %v2412_v41  ;;  %v2453_v41 = vld [vmem:[%s2754_s5 + $0xa8] sm:$0xff]  }
  0xc5   :  { %1405 = vmatpush2.bf16.msra.mxu0 %v2410_v42  ;;  %v2454_v42 = vld [vmem:[%s2754_s5 + $0x60] sm:$0xff]  }
  0xc6   :  { %1406 = vmatprep.subr.bf16.mxu0 %v2417_v43  ;;  %v2455_v43 = vld [vmem:[%s2754_s5 + $0x20] sm:$0xff]  }
  0xc9   :  { %1407 = vmatpush2.bf16.msra.mxu0 %v2415_v44  ;;  %v2456_v44 = vld [vmem:[%s2754_s5 + $0xa0] sm:$0xff]  }
  0xca   :  { %1408 = vmatprep.subr.bf16.mxu0 %v2422_v45  ;;  %v2457_v45 = vld [vmem:[%s2754_s5 + $0x58] sm:$0xff]  }
  0xcd   :  { %1409 = vmatpush2.bf16.msra.mxu0 %v2420_v46  ;;  %v2458_v46 = vld [vmem:[%s2754_s5 + $0x18] sm:$0xff]  }
  0xce   :  { %1410 = vmatprep.subr.bf16.mxu0 %v2427_v47  ;;  %v2459_v47 = vld [vmem:[%s2754_s5 + $0x98] sm:$0xff]  }
  0xd1   :  { %1411 = vmatpush2.bf16.msra.mxu0 %v2425_v48  ;;  %v2460_v48 = vld [vmem:[%s2754_s5 + $0x50] sm:$0xff]  }
  0xd2   :  { %1412 = vmatprep.subr.bf16.mxu0 %v2432_v49  ;;  %v2461_v49 = vld [vmem:[%s2754_s5 + $0x10] sm:$0xff]  }
  0xd5   :  { %1413 = vmatpush2.bf16.msra.mxu0 %v2430_v51  ;;  %v2463_v51 = vld [vmem:[%s2754_s5 + $0x48] sm:$0xff]  }
  0xd6   :  { %1414 = vmatprep.subr.bf16.mxu0 %v2437_v53  ;;  %v2465_v53 = vld [vmem:[%s2754_s5 + $0x88] sm:$0xff]  }
  0xd9   :  { %1415 = vmatpush2.bf16.msra.mxu0 %v2435_v55  ;;  %v2467_v55 = vld [vmem:[%s2754_s5] sm:$0xff]  }
  0xda   :  { %1416 = vmatprep.subr.bf16.mxu0 %v2442_v57  ;;  %v1113_v57 = vld [vmem:[%s2753_s4] sm:$0x7] }
  0xdb   :  { %v1118_v58 = vrot.slane %v1113_v57, %v205_v9  ;;  %v1122_v60 = vrot.slane %v1113_v57, %v209_v11 }
  0xdd   :  { %1417 = vmatpush2.bf16.msra.mxu0 %v2440_v59  ;;  %v1125_v59 = vsub.s32 2, %v2622_v8  ;;  %v2469_v8 = vld [vmem:[%s2756_s7 + $0x18] sm:$0xff]  }
  0xde   :  { %2141 = vmatprep.subr.bf16.mxu0 %v2523_v62 }
 0x120   :  { %v915_v63 = vpop.f32.mrf.mxu0 }
 0x121   :  { %v956_v0 = vpop.f32.mrf.mxu1  ;;  %v916_v14 = vadd.f32 %v915_v63, %v206_v12 }
 0x122   :  { %v917_v1 = vpop.f32.mrf.mxu0 }
 0x123   :  { %v958_v2 = vpop.f32.mrf.mxu1  ;;  %v918_v15 = vadd.f32 %v917_v1, %v210_v13  ;;  %v957_v16 = vadd.f32 %v956_v0, %v916_v14  ;;  %v1126_v1 = vrot.slane %v1113_v57, %v1125_v59 }
 0x124   :  { %v919_v3 = vpop.f32.mrf.mxu0 }
 0x125   :  { %v960_v4 = vpop.f32.mrf.mxu1  ;;  %v959_v19 = vadd.f32 %v958_v2, %v918_v15 }
 0x126   :  { %v920_v5 = vpop.f32.mrf.mxu0 }
 0x127   :  { %v961_v6 = vpop.f32.mrf.mxu1 }
 0x160   :  { %v997_v17 = vpop.f32.mrf.mxu0 }
 0x161   :  { %v1038_v18 = vpop.f32.mrf.mxu1  ;;  %v998_v20 = vadd.f32 %v997_v17, %v957_v16 }
 0x162   :  { %v999_v21 = vpop.f32.mrf.mxu0 }
 0x163   :  { %v1040_v22 = vpop.f32.mrf.mxu1  ;;  %v1039_v23 = vadd.f32 %v1038_v18, %v998_v20  ;;  %v1000_v24 = vadd.f32 %v999_v21, %v959_v19  ;;  %v2470_v18 = vld [vmem:[%s2756_s7 + $0x10] sm:$0xff]   ;;  %v2471_v19 = vld [vmem:[%s2756_s7 + $0x8] sm:$0xff]   ;;  %v2472_v20 = vld [vmem:[%s2756_s7] sm:$0xff]  }
 0x164   :  { %v1001_v25 = vpop.f32.mrf.mxu0 }
 0x165   :  { %v1042_v26 = vpop.f32.mrf.mxu1  ;;  %v1041_v27 = vadd.f32 %v1040_v22, %v1000_v24  ;;  %v1045_v28 = vmax.f32 %v1039_v23, 0.0  ;;  %v2050_v23 = vld [vmem:[%s2755_s6] ss:$0 sm:$0xff] }
 0x166   :  { %v1002_v29 = vpop.f32.mrf.mxu0 }
 0x167   :  { %v1043_v30 = vpop.f32.mrf.mxu1  ;;  %v1046_v31 = vmax.f32 %v1041_v27, 0.0  ;;  %v1047_v35 = vpack.c.bf16 %v1045_v28, %v1045_v28 }
 0x169   :  { %v1048_v32 = vpack.c.bf16 %v1046_v31, %v1046_v31 }
 0x16b   :  { %1418 = vmatprep.mubr.bf16.mxu0 %v1048_v32  ;;  %1459 = vmatprep.mubr.bf16.mxu1 %v1048_v32 }
 0x16c   :  { %1419 = vmatmul.mubr.bf16.vlgmr.msra.gmra.mxu0 %v1047_v35  ;;  %1460 = vmatmul.mubr.bf16.vlgmr.msra.gmra.mxu1 %v1047_v35 }
 0x16d   :  { %2106 = vmatpush3.bf16.msra.mxu1 %v2446_v33  ;;  %2142 = vmatpush3.bf16.msra.mxu0 %v2447_v34  ;;  %v2075_v34 = vld [vmem:[%s2757_s8] ss:$0 sm:$0xff] }
 0x16e   :  { %2107 = vmatprep.subr.bf16.mxu1 %v2448_v36  ;;  %2143 = vmatprep.subr.bf16.mxu0 %v2523_v62 }
 0x16f   :  { %2157 = vmatprep.mubr.msk.bf16.mxu0 %vm2524_vm0, %v2523_v62 }
 0x171   :  { %2108 = vmatpush3.bf16.msra.mxu1 %v2449_v37  ;;  %2144 = vmatpush3.bf16.msra.mxu0 %v2450_v38  ;;  %v2081_v38 = vld [vmem:[%s2758_s9] ss:$0 sm:$0xff] }
 0x172   :  { %2109 = vmatprep.subr.bf16.mxu1 %v2451_v39  ;;  %2145 = vmatprep.subr.bf16.mxu0 %v2523_v62 }
 0x175   :  { %2110 = vmatpush3.bf16.msra.mxu1 %v2452_v40  ;;  %2146 = vmatpush3.bf16.msra.mxu0 %v2453_v41 }
 0x176   :  { %2111 = vmatprep.subr.bf16.mxu1 %v2454_v42  ;;  %2147 = vmatprep.subr.bf16.mxu0 %v2523_v62 }
 0x179   :  { %2112 = vmatpush3.bf16.msra.mxu1 %v2455_v43  ;;  %2148 = vmatpush3.bf16.msra.mxu0 %v2456_v44  ;;  %v2082_v44 = vld [vmem:[#allocation2] ss:$0 sm:$0xff] }
 0x17a   :  { %2113 = vmatprep.subr.bf16.mxu1 %v2457_v45  ;;  %2149 = vmatprep.subr.bf16.mxu0 %v2523_v62 }
 0x17d   :  { %2114 = vmatpush3.bf16.msra.mxu1 %v2458_v46  ;;  %2150 = vmatpush3.bf16.msra.mxu0 %v2459_v47 }
 0x17e   :  { %2115 = vmatprep.subr.bf16.mxu1 %v2460_v48  ;;  %2151 = vmatprep.subr.bf16.mxu0 %v2523_v62 }
 0x181   :  { %2116 = vmatpush3.bf16.msra.mxu1 %v2461_v49  ;;  %2152 = vmatpush3.bf16.msra.mxu0 %v2462_v50 }
 0x182   :  { %2153 = vmatprep.subr.bf16.mxu0 %v2523_v62  ;;  %2117 = vmatprep.subr.bf16.mxu1 %v2463_v51 }
 0x185   :  { %2118 = vmatpush3.bf16.msra.mxu1 %v2464_v52  ;;  %2154 = vmatpush3.bf16.msra.mxu0 %v2465_v53 }
 0x186   :  { %2155 = vmatprep.subr.bf16.mxu0 %v2523_v62  ;;  %2119 = vmatprep.subr.bf16.mxu1 %v2466_v54 }
 0x189   :  { %2120 = vmatpush3.bf16.msra.mxu1 %v2467_v55  ;;  %2156 = vmatpush3.bf16.msra.mxu0 %v2468_v56 }
 0x18a   :  { %2161 = vmatprep.subr.bf16.mxu1 %v2523_v62 }
 0x22c   :  { %v1420_v61 = vpop.f32.mrf.mxu0  ;;  %v2099_v63 = vpop.f32.mrf.mxu1 }
 0x22d   :  { %v1421_v0 = vadd.f32 %v1420_v61, %v1118_v58 }
 0x22e   :  { %v1422_v2 = vpop.f32.mrf.mxu0  ;;  %v2100_v3 = vpop.f32.mrf.mxu1 }
 0x22f   :  { %v1423_v4 = vadd.f32 %v1422_v2, %v1122_v60  ;;  %v2101_v5 = vadd.f32 %v2100_v3, %v2099_v63  ;;  %v1467_v6 = vmax.f32 %v1421_v0, 0.0 }
 0x230   :  { %v1424_v7 = vpop.f32.mrf.mxu0  ;;  %v2102_v10 = vpop.f32.mrf.mxu1 }
 0x231   :  { %v1468_v12 = vmax.f32 %v1423_v4, 0.0  ;;  %v1462_v13 = vadd.f32 %v2101_v5, %v1126_v1  ;;  %v1470_v11 = vpack.c.bf16 %v1467_v6, %v1467_v6 }
 0x232   :  { %v1425_v14 = vpop.f32.mrf.mxu0  ;;  %v2103_v9 = vpop.f32.mrf.mxu1 }
 0x233   :  { %v1471_v15 = vpack.c.bf16 %v1468_v12, %v1468_v12  ;;  %v1469_v16 = vmax.f32 %v1462_v13, 0.0 }
 0x235   :  { %v1472_v17 = vpack.c.bf16 %v1469_v16, %v1469_v16  ;;  %1704 = vmatprep.mubr.bf16.mxu1 %v1471_v15 }
 0x236   :  { %1705 = vmatmul.mubr.bf16.vlgmr.msra.gmra.mxu1 %v1470_v11 }
 0x237   :  { %2158 = vmatmul.mubr.bf16.vlgmr.msra.gmra.mxu0 %v1472_v17  ;;  %2162 = vmatpush3.bf16.msra.mxu1 %v2469_v8 }
 0x238   :  { %2163 = vmatprep.subr.bf16.mxu1 %v2523_v62  ;;  %2169 = vmatprep.mubr.msk.bf16.mxu1 %vm2524_vm0, %v2523_v62 }
 0x23b   :  { %2164 = vmatpush3.bf16.msra.mxu1 %v2470_v18 }
 0x23c   :  { %2165 = vmatprep.subr.bf16.mxu1 %v2523_v62 }
 0x23f   :  { %2166 = vmatpush3.bf16.msra.mxu1 %v2471_v19 }
 0x240   :  { %2167 = vmatprep.subr.bf16.mxu1 %v2523_v62 }
 0x243   :  { %2168 = vmatpush3.bf16.msra.mxu1 %v2472_v20 }
 0x2f6   :  { %v2121_v21 = vpop.f32.mrf.mxu1 }
 0x2f7   :  { %v1746_v22 = vpop.f32.mrf.mxu0 }
 0x2f8   :  { %v2122_v24 = vpop.f32.mrf.mxu1 }
 0x2f9   :  { %v2123_v25 = vadd.f32 %v2122_v24, %v2121_v21  ;;  %v2159_v26 = vpop.f32.mrf.mxu0 }
 0x2fa   :  { %v2124_v27 = vpop.f32.mrf.mxu1 }
 0x2fb   :  { %v1707_v28 = vadd.f32 %v2123_v25, %v2050_v23  ;;  %v1749_v29 = vpop.f32.mrf.mxu0 }
 0x2fc   :  { %v2125_v30 = vpop.f32.mrf.mxu1 }
 0x2fd   :  { %v1747_v31 = vadd.f32 %v1746_v22, %v1707_v28  ;;  %v2160_v62 = vpop.f32.mrf.mxu0 }
 0x2ff   :  { %v1752_v32 = vmax.f32 %v1747_v31, 0.0 }
 0x301   :  { %v1753_v33 = vpack.c.bf16 %v1752_v32, %v1752_v32 }
 0x303   :  { %2170 = vmatmul.mubr.msk.bf16.vlgmr.msra.gmra.mxu1 %vm1793_vm1, %v1753_v33 }
 0x3c3   :  { %v1831_v35 = vpop.f32.mrf.mxu1 }
 0x3c4   :  { %v1832_v36 = vadd.f32 %v2075_v34, %v1831_v35 }
 0x3c5   :  { %v2171_v37 = vpop.f32.mrf.mxu1 }
 0x3c6   :  { %v1837_v39 = vmax.f32 %v1832_v36, 0.0 }
 0x3c7   :  { %v1834_v40 = vpop.f32.mrf.mxu1 }
 0x3c8   :  { %v1845_v41 = vmul.f32 %v2081_v38, %v1837_v39 }
 0x3c9   :  { %v2172_v42 = vpop.f32.mrf.mxu1 }
 0x3ca   :  { %v1847_v43 = vsel %vm1846_vm2, %v1845_v41, 0.0 }
 0x3cb   :  { %1848 = vadd.xlane.f32.xlu0 %v1847_v43 }
 0x454   :  { %v1849_v45 = vpop.xlane.xlu0 %1848 }
 0x455   :  { %v1857_v46 = vadd.f32 %v2082_v44, %v1849_v45 }
 0x457   :  { %1859 = vst.msk [vmem:[%s2760_s11] sm:$0xff] %vm1858_vm3, %v1857_v46 }
 0x458   :  { %1864 = vsyncpa [#allocation4], 1 }
 0x459   :  { %1865 = vsyncpa [#allocation6], 1 }

</bundles_post_ra>
